<compile_context>
chip_gen: v7x
topology: tpu7x:2x2x1
jax: 0.10.0
libtpu: 0.0.40
codegen_flags: <defaults>
</compile_context>

<pallas_src>
import functools
import math

import jax
import jax.numpy as jnp
from jax.experimental import pallas as pl
from jax.experimental.pallas import tpu as pltpu

LN_EPS = 1e-5          # nn.LayerNorm default eps
_LANES = 128
_MAX_PACK_WIDTH = 512  # largest packed row width P = k*D (seg matrix is (P, P) f32)


def _residual_ln_packed_kernel(x_ref, y_ref, g_ref, b_ref, seg_ref, o_ref, *, inv_d):
    """Block = (tr, P) with P = k*D lane-dense; seg_ref = block-diag ones (P, P)."""
    u = x_ref[...].astype(jnp.float32) - jnp.maximum(
        y_ref[...].astype(jnp.float32), 0.0)
    seg = seg_ref[...]
    # Per-original-row sum + broadcast back across that row's D lanes in one
    # tiny f32 MXU matmul each (MXU is otherwise idle; kernel is HBM-bound,
    # everything stays lane-dense with last dim a multiple of 128).
    mean = jnp.dot(u, seg, precision=jax.lax.Precision.HIGHEST,
                   preferred_element_type=jnp.float32) * inv_d
    c = u - mean
    var = jnp.dot(c * c, seg, precision=jax.lax.Precision.HIGHEST,
                  preferred_element_type=jnp.float32) * inv_d
    norm = c * jax.lax.rsqrt(var + LN_EPS)
    o_ref[...] = (norm * g_ref[...] + b_ref[...]).astype(o_ref.dtype)


def _residual_ln_plain_kernel(x_ref, y_ref, g_ref, b_ref, o_ref):
    """Block = (tr, D); D lane-dense or full-width; reduce along lanes."""
    u = x_ref[...].astype(jnp.float32) - jnp.maximum(
        y_ref[...].astype(jnp.float32), 0.0)
    mean = jnp.mean(u, axis=-1, keepdims=True)
    c = u - mean
    var = jnp.mean(c * c, axis=-1, keepdims=True)
    norm = c * jax.lax.rsqrt(var + LN_EPS)
    o_ref[...] = (norm * g_ref[...] + b_ref[...]).astype(o_ref.dtype)


def _min_grid_steps():
    """>= 2 grid steps per TensorCore on 2-core parts; 1 otherwise (v5e/v6e)."""
    try:
        kind = jax.devices()[0].device_kind.lower()
    except Exception:
        return 1
    two_core = any(tag in kind for tag in ("v7", "v4", "v5p", "v6p"))
    return 4 if two_core else 1


def _vmem_limit_bytes():
    """Generous scoped-VMEM ceiling that still leaves headroom on v7x (64 MiB/TC)."""
    cap = 48 << 20
    try:
        phys = int(pltpu.get_tpu_info().vmem_capacity_bytes)
        cap = int(min(cap, max(16 << 20, phys - (16 << 20))))
    except Exception:
        pass
    return cap


def _pick_rows_per_block(n_rows, row_width, itemsize, budget_bytes,
                         max_rows=4096, min_steps=1):
    """Largest sublane-aligned row tile whose pipelined footprint fits the budget."""
    sub = max(8, 32 // itemsize)  # 8 for f32, 16 for bf16, 32 for int8/fp8
    # 3 streams x 2 pipeline buffers at the I/O dtype + ~8 f32 block temporaries.
    per_row_bytes = row_width * (6 * itemsize + 8 * 4)
    tr = min(max_rows, max(sub, budget_bytes // per_row_bytes))
    tr = max(sub, (tr // sub) * sub)
    if min_steps > 1 and pl.cdiv(n_rows, tr) < min_steps:
        # Evenly sized steps so every TensorCore gets >= 2 similar blocks
        # (restores DMA/compute overlap and load balance on v7x megacore).
        tr = max(sub, min(tr, pl.cdiv(pl.cdiv(n_rows, min_steps), sub) * sub))
    if tr >= n_rows:
        tr = n_rows  # one full block; legal since it equals the full array dim
    return tr


def residual_decomp(x, y, gamma, beta, *, rows_per_block=None,
                    vmem_budget_bytes=24 << 20):
    """x, y: [..., D]; gamma, beta: [D].  Returns LayerNorm(x - relu(y))."""
    assert x.shape == y.shape
    D = x.shape[-1]
    lead = x.shape[:-1]
    N = int(math.prod(lead)) if lead else 1

    itemsize = jnp.dtype(x.dtype).itemsize
    sub = max(8, 32 // itemsize)

    # Lane packing: put k = lcm(D, 128)/D original rows into one P = k*D wide
    # row (P a multiple of 128) so all VPU work and all stores stay lane-dense.
    lcm = (D * _LANES) // math.gcd(D, _LANES)
    k = lcm // D if (D % _LANES != 0 and lcm <= _MAX_PACK_WIDTH) else 1
    P = k * D

    x2 = x.reshape(N, D)
    y2 = y.reshape(N, D)
    # Pad only to a multiple of k (at most k-1 zero rows) so the (N, D) ->
    # (N/k, P) packing reshape is valid.  Ragged final grid blocks are handled
    # by Pallas: OOB reads stay in their own (per-row-stat) rows, OOB stores
    # are dropped.
    n_pad = (-N) % k
    if n_pad:
        x2 = jnp.pad(x2, ((0, n_pad), (0, 0)))
        y2 = jnp.pad(y2, ((0, n_pad), (0, 0)))
    np_rows = (N + n_pad) // k
    if k > 1:
        x2 = x2.reshape(np_rows, P)
        y2 = y2.reshape(np_rows, P)

    min_steps = _min_grid_steps()
    if rows_per_block is None:
        tr = _pick_rows_per_block(np_rows, P, itemsize, vmem_budget_bytes,
                                  min_steps=min_steps)
    else:
        tr = max(sub, (int(rows_per_block) // sub) * sub)
        if tr >= np_rows:
            tr = np_rows
    grid = (pl.cdiv(np_rows, tr),)

    # Affine params: cast to f32 once in the wrapper; constant index_map keeps
    # them resident across the whole grid.
    g2 = jnp.tile(gamma.astype(jnp.float32).reshape(1, D), (1, k))
    b2 = jnp.tile(beta.astype(jnp.float32).reshape(1, D), (1, k))

    common_in_specs = [
        pl.BlockSpec((tr, P), lambda i: (i, 0)),
        pl.BlockSpec((tr, P), lambda i: (i, 0)),
        pl.BlockSpec((1, P), lambda i: (0, 0)),
        pl.BlockSpec((1, P), lambda i: (0, 0)),
    ]
    out_spec = pl.BlockSpec((tr, P), lambda i: (i, 0))
    out_shape = jax.ShapeDtypeStruct((np_rows, P), x.dtype)

    if k > 1:
        lane_ids = jnp.arange(P, dtype=jnp.int32) // D
        seg = (lane_ids[:, None] == lane_ids[None, :]).astype(jnp.float32)
        kernel = functools.partial(_residual_ln_packed_kernel, inv_d=1.0 / D)
        in_specs = common_in_specs + [pl.BlockSpec((P, P), lambda i: (0, 0))]
        args = (x2, y2, g2, b2, seg)
        matmul_flops = 4 * np_rows * P * P
    else:
        kernel = _residual_ln_plain_kernel
        in_specs = common_in_specs
        args = (x2, y2, g2, b2)
        matmul_flops = 0

    cost = pl.CostEstimate(
        flops=int(10 * N * D + matmul_flops),
        transcendentals=int(N),
        bytes_accessed=int(3 * N * D * itemsize),
    )

    out = pl.pallas_call(
        kernel,
        out_shape=out_shape,
        grid_spec=pltpu.PrefetchScalarGridSpec(
            num_scalar_prefetch=0,
            grid=grid,
            in_specs=in_specs,
            out_specs=out_spec,
        ),
        compiler_params=pltpu.CompilerParams(
            dimension_semantics=("parallel",),
            vmem_limit_bytes=_vmem_limit_bytes(),
        ),
        cost_estimate=cost,
    )(*args)

    out = out.reshape(np_rows * k, D)
    if n_pad:
        out = out[:N]
    return out.reshape(*lead, D)


def residual_decomp_ref(x, y, gamma, beta):
    u = x - jnp.maximum(y, 0.0)
    mean = jnp.mean(u, axis=-1, keepdims=True)
    var = jnp.mean((u - mean) ** 2, axis=-1, keepdims=True)
    return (u - mean) / jnp.sqrt(var + LN_EPS) * gamma + beta


if __name__ == "__main__":
    key = jax.random.PRNGKey(0)
    kx, ky, kg, kb = jax.random.split(key, 4)

    # Shapes implied by the module: [batch, seq, hidden], hidden == 32.
    B, S, D = 2, 8, 32
    x = jax.random.normal(kx, (B, S, D), dtype=jnp.float32)
    y = jax.random.normal(ky, (B, S, D), dtype=jnp.float32)
    gamma = jnp.ones((D,), dtype=jnp.float32)   # torch LayerNorm default init
    beta = jnp.zeros((D,), dtype=jnp.float32)

    out = residual_decomp(x, y, gamma, beta)
    jax.block_until_ready(out)
    ref = residual_decomp_ref(x, y, gamma, beta)
    assert out.shape == (B, S, D)
    assert jnp.allclose(out, ref, atol=1e-4, rtol=1e-4), "mismatch (packed path)"

    # Uneven row count (pad-to-k + ragged grid block) + non-trivial affine params.
    g2 = 1.0 + 0.1 * jax.random.normal(kg, (D,), dtype=jnp.float32)
    b2 = 0.1 * jax.random.normal(kb, (D,), dtype=jnp.float32)
    x2 = jax.random.normal(kx, (3, 7, D), dtype=jnp.float32)
    y2 = jax.random.normal(ky, (3, 7, D), dtype=jnp.float32)
    out2 = residual_decomp(x2, y2, g2, b2)
    jax.block_until_ready(out2)
    assert jnp.allclose(out2, residual_decomp_ref(x2, y2, g2, b2),
                        atol=1e-4, rtol=1e-4), "mismatch (ragged packed path)"

    # Generalized packing: D = 96 -> k = 4, P = 384 (lane-dense, no masked stores).
    D3 = 96
    x3 = jax.random.normal(kx, (2, 5, D3), dtype=jnp.float32)
    y3 = jax.random.normal(ky, (2, 5, D3), dtype=jnp.float32)
    g3 = 1.0 + 0.1 * jax.random.normal(kg, (D3,), dtype=jnp.float32)
    b3 = 0.1 * jax.random.normal(kb, (D3,), dtype=jnp.float32)
    out3 = residual_decomp(x3, y3, g3, b3)
    jax.block_until_ready(out3)
    assert jnp.allclose(out3, residual_decomp_ref(x3, y3, g3, b3),
                        atol=1e-4, rtol=1e-4), "mismatch (generalized packed path)"

    # Lane-dense hidden size (plain path, D % 128 == 0).
    D4 = 256
    x4 = jax.random.normal(kx, (2, 8, D4), dtype=jnp.float32)
    y4 = jax.random.normal(ky, (2, 8, D4), dtype=jnp.float32)
    g4 = jnp.ones((D4,), dtype=jnp.float32)
    b4 = jnp.zeros((D4,), dtype=jnp.float32)
    out4 = residual_decomp(x4, y4, g4, b4)
    jax.block_until_ready(out4)
    assert jnp.allclose(out4, residual_decomp_ref(x4, y4, g4, b4),
                        atol=1e-4, rtol=1e-4), "mismatch (plain path)"

    print("KERNEL_OK")
</pallas_src>

<mosaic_0001>
module attributes {stable_mosaic.version = 11 : i64} {
  func.func @_residual_ln_packed_kernel(%arg0: i32, %arg1: memref<4x128xf32, #tpu.memory_space<vmem>>, %arg2: memref<4x128xf32, #tpu.memory_space<vmem>>, %arg3: memref<1x128xf32, #tpu.memory_space<vmem>>, %arg4: memref<1x128xf32, #tpu.memory_space<vmem>>, %arg5: memref<128x128xf32, #tpu.memory_space<vmem>>, %arg6: memref<4x128xf32, #tpu.memory_space<vmem>>) attributes {dimension_semantics = [#tpu.dimension_semantics<parallel>], iteration_bounds = array<i64: 1>, scalar_prefetch = 0 : i64, scratch_operands = 0 : i64, tpu.core_type = #tpu.core_type<tc>, window_params = [{transform_indices = @transform_0, window_bounds = array<i64: 4, 128>}, {transform_indices = @transform_1, window_bounds = array<i64: 4, 128>}, {pipeline_mode = #tpu.pipeline_mode<synchronous>, transform_indices = @transform_2, window_bounds = array<i64: 1, 128>}, {pipeline_mode = #tpu.pipeline_mode<synchronous>, transform_indices = @transform_3, window_bounds = array<i64: 1, 128>}, {pipeline_mode = #tpu.pipeline_mode<synchronous>, transform_indices = @transform_4, window_bounds = array<i64: 128, 128>}, {transform_indices = @transform_5, window_bounds = array<i64: 4, 128>}]} {
    %c0 = arith.constant 0 : index
    %c0_0 = arith.constant 0 : index
    %0 = vector.load %arg1[%c0, %c0_0] : memref<4x128xf32, #tpu.memory_space<vmem>>, vector<4x128xf32>
    %c0_1 = arith.constant 0 : index
    %c0_2 = arith.constant 0 : index
    %1 = vector.load %arg2[%c0_1, %c0_2] : memref<4x128xf32, #tpu.memory_space<vmem>>, vector<4x128xf32>
    %cst = arith.constant 0.000000e+00 : f32
    %2 = vector.broadcast %cst : f32 to vector<4x128xf32>
    %3 = arith.maximumf %1, %2 : vector<4x128xf32>
    %4 = arith.subf %0, %3 : vector<4x128xf32>
    %c0_3 = arith.constant 0 : index
    %c0_4 = arith.constant 0 : index
    %5 = vector.load %arg5[%c0_3, %c0_4] : memref<128x128xf32, #tpu.memory_space<vmem>>, vector<128x128xf32>
    %cst_5 = arith.constant dense<0.000000e+00> : vector<4x128xf32>
    %6 = tpu.matmul %4, %5, %cst_5 {dimension_numbers = #tpu.dot_dimension_numbers<[1], [0], [0], [1], [0, 0, 1, 1], [], []>, precision = #tpu.contract_precision<fp32>} : vector<4x128xf32>, vector<128x128xf32>, vector<4x128xf32> -> vector<4x128xf32>
    %cst_6 = arith.constant 3.125000e-02 : f32
    %7 = vector.broadcast %cst_6 : f32 to vector<4x128xf32>
    %8 = arith.mulf %6, %7 : vector<4x128xf32>
    %9 = arith.subf %4, %8 : vector<4x128xf32>
    %10 = arith.mulf %9, %9 : vector<4x128xf32>
    %cst_7 = arith.constant dense<0.000000e+00> : vector<4x128xf32>
    %11 = tpu.matmul %10, %5, %cst_7 {dimension_numbers = #tpu.dot_dimension_numbers<[1], [0], [0], [1], [0, 0, 1, 1], [], []>, precision = #tpu.contract_precision<fp32>} : vector<4x128xf32>, vector<128x128xf32>, vector<4x128xf32> -> vector<4x128xf32>
    %cst_8 = arith.constant 3.125000e-02 : f32
    %12 = vector.broadcast %cst_8 : f32 to vector<4x128xf32>
    %13 = arith.mulf %11, %12 : vector<4x128xf32>
    %cst_9 = arith.constant 9.99999974E-6 : f32
    %14 = vector.broadcast %cst_9 : f32 to vector<4x128xf32>
    %15 = arith.addf %13, %14 : vector<4x128xf32>
    %16 = math.rsqrt %15 : vector<4x128xf32>
    %17 = arith.mulf %9, %16 : vector<4x128xf32>
    %c0_10 = arith.constant 0 : index
    %c0_11 = arith.constant 0 : index
    %18 = vector.load %arg3[%c0_10, %c0_11] : memref<1x128xf32, #tpu.memory_space<vmem>>, vector<1x128xf32>
    %19 = vector.broadcast %18 : vector<1x128xf32> to vector<4x128xf32>
    %20 = arith.mulf %17, %19 : vector<4x128xf32>
    %c0_12 = arith.constant 0 : index
    %c0_13 = arith.constant 0 : index
    %21 = vector.load %arg4[%c0_12, %c0_13] : memref<1x128xf32, #tpu.memory_space<vmem>>, vector<1x128xf32>
    %22 = vector.broadcast %21 : vector<1x128xf32> to vector<4x128xf32>
    %23 = arith.addf %20, %22 : vector<4x128xf32>
    %c0_14 = arith.constant 0 : index
    %c0_15 = arith.constant 0 : index
    %24 = vector.load %arg6[%c0_14, %c0_15] : memref<4x128xf32, #tpu.memory_space<vmem>>, vector<4x128xf32>
    tpu.vector_store %arg6[%c0_14, %c0_15], %23 {strides = array<i32>} : memref<4x128xf32, #tpu.memory_space<vmem>>, vector<4x128xf32>,
    return
  }
  func.func @transform_0(%arg0: i32) -> (i32, i32) {
    %c0_i32 = arith.constant 0 : i32
    %c0_i32_0 = arith.constant 0 : i32
    return %arg0, %c0_i32 : i32, i32
  }
  func.func @transform_1(%arg0: i32) -> (i32, i32) {
    %c0_i32 = arith.constant 0 : i32
    %c0_i32_0 = arith.constant 0 : i32
    return %arg0, %c0_i32 : i32, i32
  }
  func.func @transform_2(%arg0: i32) -> (i32, i32) {
    %c0_i32 = arith.constant 0 : i32
    %c0_i32_0 = arith.constant 0 : i32
    %c0_i32_1 = arith.constant 0 : i32
    return %c0_i32, %c0_i32_0 : i32, i32
  }
  func.func @transform_3(%arg0: i32) -> (i32, i32) {
    %c0_i32 = arith.constant 0 : i32
    %c0_i32_0 = arith.constant 0 : i32
    %c0_i32_1 = arith.constant 0 : i32
    return %c0_i32, %c0_i32_0 : i32, i32
  }
  func.func @transform_4(%arg0: i32) -> (i32, i32) {
    %c0_i32 = arith.constant 0 : i32
    %c0_i32_0 = arith.constant 0 : i32
    %c0_i32_1 = arith.constant 0 : i32
    return %c0_i32, %c0_i32_0 : i32, i32
  }
  func.func @transform_5(%arg0: i32) -> (i32, i32) {
    %c0_i32 = arith.constant 0 : i32
    %c0_i32_0 = arith.constant 0 : i32
    return %arg0, %c0_i32 : i32, i32
  }
}

</mosaic_0001>

<bundles_post_ra>
// kernel: tpu_custom_call.1
= control target key start
LH: loop header
LB: loop body
LE: loop exit
PB: predicated region body
PF: predicated region fallthrough
CT: control target
= control target key end

     0   :  { %10 = vsyncpa [#allocation3], 0  ;;  %s2923_s0 = inlined_call_operand.hbm [shape: f32[4,128], index: 0, kind: input, shape index: {}]   ;;  %s2924_s1 = inlined_call_operand.hbm [shape: f32[4,128], index: 1, kind: input, shape index: {}]   ;;  %s2925_s2 = inlined_call_operand.vmem [shape: f32[1,128], index: 2, kind: input, shape index: {}]   ;;  %s2926_s3 = inlined_call_operand.vmem [shape: f32[1,128], index: 3, kind: input, shape index: {}]   ;;  %s2927_s4 = inlined_call_operand.hbm [shape: f32[128,128], index: 4, kind: input, shape index: {}]   ;;  %s2928_s5 = inlined_call_operand.hbm [shape: f32[4,128], index: 5, kind: output, shape index: {}]  }
   0x1   :  { %11 = vsyncpa [#allocation6], 0 }
   0x2   :  { %12 = vsyncpa [#allocation4], 0  ;;  %s2439_s18 = smov [#allocation5]   ;;  %s2440_s20 = smov [#allocation2]  }
   0x3   :  { %s29_s19 = sshll.u32 %s2439_s18, 4  ;;  %s19_s21 = sshll.u32 %s2440_s20, 4  ;;  %s30_s19 = int_to_ptr.vmem [resolvable:$true] %s29_s19  ;;  %s20_s21 = int_to_ptr.vmem [resolvable:$true] %s19_s21 }
   0x4   :  { %s2345_s24 = scalar_lea.hbm %s2924_s1, 64 }
   0x5   :  { %p2346_p0 = scmp.ne.s32.totalorder %s2924_s1, %s2345_s24  ;;  %p2349_p1 = scmp.lt.u32.totalorder %s2345_s24, %s2924_s1 }
   0x7   :  { %p2351_p2 = pnand %p2349_p1, %p2346_p0 }
   0x9   :  { %2354 = shalt.err (!%p2351_p2)
}
   0xa   :  { %s2355_s29 = scalar_lea.vmem %s30_s19, 64  ;;  %p2360_p4 = scmp.lt.s32.totalorder %s30_s19, %s30_s19 }
   0xb   :  { %p2356_p3 = scmp.ne.s32.totalorder %s30_s19, %s2355_s29  ;;  %p2361_p5 = scmp.lt.s32.totalorder %s2355_s29, %s2355_s29 }
   0xd   :  { %p2362_p6 = por %p2361_p5, %p2360_p4 }
   0xf   :  { %p2363_p7 = pnand %p2362_p6, %p2356_p3 }
  0x11   :  { %2366 = shalt.err (!%p2363_p7)
}
  0x12   :  { %32 = dma.hbm_to_vmem [thread:$0]  %s2924_s1, 64, %s30_s19, [#allocation6]  }
  0x13   :  { %s2367_s9 = scalar_lea.hbm %s2923_s0, 64 }
  0x14   :  { %p2368_p8 = scmp.ne.s32.totalorder %s2923_s0, %s2367_s9  ;;  %p2371_p9 = scmp.lt.u32.totalorder %s2367_s9, %s2923_s0 }
  0x16   :  { %p2373_p10 = pnand %p2371_p9, %p2368_p8 }
  0x18   :  { %2376 = shalt.err (!%p2373_p10)
}
  0x19   :  { %s2377_s14 = scalar_lea.vmem %s20_s21, 64  ;;  %p2382_p12 = scmp.lt.s32.totalorder %s20_s21, %s20_s21 }
  0x1a   :  { %p2378_p11 = scmp.ne.s32.totalorder %s20_s21, %s2377_s14  ;;  %p2383_p13 = scmp.lt.s32.totalorder %s2377_s14, %s2377_s14 }
  0x1c   :  { %p2384_p0 = por %p2383_p13, %p2382_p12 }
  0x1e   :  { %p2385_p1 = pnand %p2384_p0, %p2378_p11 }
  0x20   :  { %2388 = shalt.err (!%p2385_p1)
}
  0x21   :  { %22 = dma.hbm_to_vmem [thread:$0]  %s2923_s0, 64, %s20_s21, [#allocation3]  }
  0x22   :  { %s2441_s16 = smov [#allocation7]   ;;  %s2389_s20 = scalar_lea.hbm %s2927_s4, 2048 }
  0x23   :  { %s42_s17 = sshll.u32 %s2441_s16, 4  ;;  %p2390_p2 = scmp.ne.s32.totalorder %s2927_s4, %s2389_s20  ;;  %s43_s17 = int_to_ptr.vmem [resolvable:$true] %s42_s17 }
  0x24   :  { %p2393_p3 = scmp.lt.u32.totalorder %s2389_s20, %s2927_s4 }
  0x26   :  { %p2395_p4 = pnand %p2393_p3, %p2390_p2 }
  0x28   :  { %2398 = shalt.err (!%p2395_p4)
}
  0x29   :  { %s2399_s26 = scalar_lea.vmem %s43_s17, 2048  ;;  %p2404_p6 = scmp.lt.s32.totalorder %s43_s17, %s43_s17 }
  0x2a   :  { %p2400_p5 = scmp.ne.s32.totalorder %s43_s17, %s2399_s26  ;;  %p2405_p7 = scmp.lt.s32.totalorder %s2399_s26, %s2399_s26 }
  0x2c   :  { %p2406_p8 = por %p2405_p7, %p2404_p6 }
  0x2e   :  { %p2407_p9 = pnand %p2406_p8, %p2400_p5 }
  0x30   :  { %2410 = shalt.err (!%p2407_p9)
}
  0x31   :  { %s2442_s0 = smov 128   ;;  %s2443_s21 = smov 8  }
  0x32   :  { %48 = dma.hbm_to_vmem [thread:$0]  %s2927_s4, 2048, %s43_s17, [#allocation6], %s2442_s0, %s2442_s0, %s2443_s21  }
  0x33   :  { %2433 = dma.done.wait [#allocation3], 64  }
  0x34   :  { %2434 = vsyncadd [#allocation3], 4294967232 }
  0x35   :  { %2435 = dma.done.wait [#allocation6], 2112  }
  0x36   :  { %2436 = vsyncadd [#allocation6], 4294965184  ;;  %v2444_v0 = vmov 0.0|0.0   ;;  %vm2445_vm0 = vmmov 0   ;;  %v2446_v1 = vmov 0.0   ;;  %v62_v2 = vld [vmem:[#allocation7] sm:$0xff] }
  0x37   :  { %2026 = vmatprep.subr.bf16.mxu0 %v2444_v0  ;;  %1638 = vmatprep.mubr.msk.f32.mxu0 %vm2445_vm0, %v2446_v1  ;;  %v63_v3 = vld [vmem:[#allocation7 + $0x8] sm:$0xff]  ;;  %v64_v4 = vld [vmem:[#allocation7 + $0x10] sm:$0xff]  ;;  %v79_v5 = vand.u32 4294901760, %v62_v2  ;;  %v65_v7 = vld [vmem:[#allocation7 + $0x18] sm:$0xff]  ;;  %s2447_s7 = smov [#allocation8]  }
  0x38   :  { %2170 = vmatprep.subr.bf16.mxu1 %v2444_v0  ;;  %1848 = vmatprep.mubr.msk.f32.mxu1 %vm2445_vm0, %v2446_v1  ;;  %v82_v6 = vand.u32 4294901760, %v63_v3  ;;  %v85_v8 = vand.u32 4294901760, %v64_v4  ;;  %v88_v9 = vand.u32 4294901760, %v65_v7  ;;  %v66_v10 = vld [vmem:[#allocation7 + $0x20] sm:$0xff]  ;;  %v67_v11 = vld [vmem:[#allocation7 + $0x28] sm:$0xff]  ;;  %v68_v16 = vld [vmem:[#allocation7 + $0x30] sm:$0xff] }
  0x39   :  { %v91_v14 = vand.u32 4294901760, %v66_v10  ;;  %v94_v15 = vand.u32 4294901760, %v67_v11  ;;  %v69_v17 = vld [vmem:[#allocation7 + $0x38] sm:$0xff]  ;;  %v97_v22 = vand.u32 4294901760, %v68_v16  ;;  %v70_v24 = vld [vmem:[#allocation7 + $0x40] sm:$0xff]  ;;  %v71_v25 = vld [vmem:[#allocation7 + $0x48] sm:$0xff]  ;;  %v2536_v30 = vsub.f32 %v62_v2, %v79_v5 }
  0x3a   :  { %v2520_v12 = vpack.c.bf16 %v82_v6, %v79_v5  ;;  %v2523_v13 = vpack.c.bf16 %v88_v9, %v85_v8  ;;  %v59_v18 = vld [vmem:[#allocation5] sm:$0xf]  ;;  %v58_v19 = vld [vmem:[#allocation2] sm:$0xf]  ;;  %v100_v23 = vand.u32 4294901760, %v69_v17  ;;  %v72_v27 = vld [vmem:[#allocation7 + $0x50] sm:$0xff]  ;;  %v2541_v37 = vsub.f32 %v63_v3, %v82_v6 }
  0x3b   :  { %v60_v20 = vmax.f32 %v59_v18, 0.0  ;;  %v2529_v21 = vpack.c.bf16 %v94_v15, %v91_v14  ;;  %v73_v28 = vld [vmem:[#allocation7 + $0x58] sm:$0xff]  ;;  %v74_v29 = vld [vmem:[#allocation7 + $0x60] sm:$0xff]  ;;  %v103_v32 = vand.u32 4294901760, %v70_v24  ;;  %v106_v33 = vand.u32 4294901760, %v71_v25  ;;  %v75_v34 = vld [vmem:[#allocation7 + $0x68] sm:$0xff] }
  0x3c   :  { %2028 = vmatpush3.bf16.msra.mxu0 %v2520_v12  ;;  %2172 = vmatpush3.bf16.msra.mxu1 %v2520_v12  ;;  %v2539_v31 = vpack.c.bf16 %v100_v23, %v97_v22  ;;  %v76_v35 = vld [vmem:[#allocation7 + $0x70] sm:$0xff]  ;;  %v77_v36 = vld [vmem:[#allocation7 + $0x78] sm:$0xff]  ;;  %v109_v39 = vand.u32 4294901760, %v72_v27  ;;  %v112_v40 = vand.u32 4294901760, %v73_v28  ;;  %v115_v41 = vand.u32 4294901760, %v74_v29  ;;  %s1390_s8 = sshll.u32 %s2447_s7, 4  ;;  %s1391_s8 = int_to_ptr.vmem [resolvable:$true] %s1390_s8 }
  0x3d   :  { %2029 = vmatprep.subr.bf16.mxu0 %v2444_v0  ;;  %2173 = vmatprep.subr.bf16.mxu1 %v2444_v0  ;;  %v2533_v26 = vsub.f32 %v58_v19, %v60_v20  ;;  %v118_v42 = vand.u32 4294901760, %v75_v34  ;;  %v121_v43 = vand.u32 4294901760, %v76_v35  ;;  %v124_v44 = vand.u32 4294901760, %v77_v36  ;;  %s2411_s9 = scalar_lea.vmem %s1391_s8, 64  ;;  %p2416_p11 = scmp.lt.s32.totalorder %s1391_s8, %s1391_s8 }
  0x3e   :  { %v172_v45 = vand.u32 4294901760, %v2536_v30  ;;  %v2551_v46 = vpack.c.bf16 %v106_v33, %v103_v32  ;;  %v179_v47 = vand.u32 4294901760, %v2541_v37  ;;  %v2554_v48 = vsub.f32 %v64_v4, %v85_v8  ;;  %p2412_p10 = scmp.ne.s32.totalorder %s1391_s8, %s2411_s9  ;;  %p2417_p12 = scmp.lt.s32.totalorder %s2411_s9, %s2411_s9 }
  0x3f   :  { %v2546_v38 = vand.u32 4294901760, %v2533_v26  ;;  %v2556_v49 = vsub.f32 %v65_v7, %v88_v9  ;;  %v2563_v51 = vsub.f32 %v66_v10, %v91_v14  ;;  %v2566_v52 = vpack.c.bf16 %v112_v40, %v109_v39 }
  0x40   :  { %2031 = vmatpush3.bf16.msra.mxu0 %v2523_v13  ;;  %2175 = vmatpush3.bf16.msra.mxu1 %v2523_v13  ;;  %v2569_v53 = vpack.c.bf16 %v118_v42, %v115_v41  ;;  %v2571_v54 = vpack.c.bf16 %v124_v44, %v121_v43  ;;  %v173_v55 = vsub.f32 %v2536_v30, %v172_v45  ;;  %v186_v58 = vand.u32 4294901760, %v2554_v48  ;;  %p2418_p13 = por %p2417_p12, %p2416_p11 }
  0x41   :  { %2032 = vmatprep.subr.bf16.mxu0 %v2444_v0  ;;  %2176 = vmatprep.subr.bf16.mxu1 %v2444_v0  ;;  %v2561_v50 = vsub.f32 %v2533_v26, %v2546_v38  ;;  %v2574_v56 = vsub.f32 %v67_v11, %v94_v15  ;;  %v180_v57 = vsub.f32 %v2541_v37, %v179_v47  ;;  %v193_v59 = vand.u32 4294901760, %v2556_v49 }
  0x42   :  { %v2580_v60 = vsub.f32 %v68_v16, %v97_v22  ;;  %v200_v62 = vand.u32 4294901760, %v2563_v51  ;;  %v2585_v63 = vsub.f32 %v69_v17, %v100_v23  ;;  %v2587_v2 = vsub.f32 %v70_v24, %v103_v32  ;;  %p2419_p0 = pnand %p2418_p13, %p2412_p10 }
  0x43   :  { %v161_v61 = vand.u32 4294901760, %v2561_v50  ;;  %v2590_v3 = vsub.f32 %v71_v25, %v106_v33  ;;  %v2592_v4 = vsub.f32 %v72_v27, %v109_v39  ;;  %v2594_v5 = vsub.f32 %v73_v28, %v112_v40 }
  0x44   :  { %2034 = vmatpush3.bf16.msra.mxu0 %v2529_v21  ;;  %2178 = vmatpush3.bf16.msra.mxu1 %v2529_v21  ;;  %v2596_v6 = vsub.f32 %v74_v29, %v115_v41  ;;  %v207_v7 = vand.u32 4294901760, %v2574_v56  ;;  %v2600_v8 = vsub.f32 %v75_v34, %v118_v42  ;;  %v2602_v9 = vsub.f32 %v76_v35, %v121_v43 }
  0x45   :  { %2035 = vmatprep.subr.bf16.mxu0 %v2444_v0  ;;  %2179 = vmatprep.subr.bf16.mxu1 %v2444_v0  ;;  %v2604_v10 = vsub.f32 %v77_v36, %v124_v44  ;;  %v174_v11 = vand.u32 4294901760, %v173_v55  ;;  %v187_v14 = vsub.f32 %v2554_v48, %v186_v58  ;;  %v194_v15 = vsub.f32 %v2556_v49, %v193_v59 }
  0x46   :  { %v214_v16 = vand.u32 4294901760, %v2580_v60  ;;  %v162_v17 = vsub.f32 %v2561_v50, %v161_v61  ;;  %v181_v18 = vand.u32 4294901760, %v180_v57  ;;  %v221_v19 = vand.u32 4294901760, %v2585_v63 }
  0x47   :  { %v228_v20 = vand.u32 4294901760, %v2587_v2  ;;  %v235_v22 = vand.u32 4294901760, %v2590_v3  ;;  %v242_v23 = vand.u32 4294901760, %v2592_v4  ;;  %v249_v24 = vand.u32 4294901760, %v2594_v5 }
  0x48   :  { %2037 = vmatpush3.bf16.msra.mxu0 %v2539_v31  ;;  %2181 = vmatpush3.bf16.msra.mxu1 %v2539_v31  ;;  %v256_v25 = vand.u32 4294901760, %v2596_v6  ;;  %v263_v27 = vand.u32 4294901760, %v2600_v8  ;;  %v270_v28 = vand.u32 4294901760, %v2602_v9  ;;  %v277_v29 = vand.u32 4294901760, %v2604_v10 }
  0x49   :  { %2038 = vmatprep.subr.bf16.mxu0 %v2444_v0  ;;  %2182 = vmatprep.subr.bf16.mxu1 %v2444_v0  ;;  %v2625_v32 = vpack.c.bf16 %v179_v47, %v172_v45  ;;  %v2628_v33 = vpack.c.bf16 %v193_v59, %v186_v58  ;;  %v2630_v34 = vpack.c.bf16 %v207_v7, %v200_v62  ;;  %v163_v42 = vand.u32 4294901760, %v162_v17 }
  0x4a   :  { %v2632_v35 = vpack.c.bf16 %v221_v19, %v214_v16  ;;  %v2634_v36 = vpack.c.bf16 %v235_v22, %v228_v20  ;;  %v2637_v39 = vpack.c.bf16 %v249_v24, %v242_v23  ;;  %v2639_v40 = vpack.c.bf16 %v263_v27, %v256_v25 }
  0x4b   :  { %v2641_v41 = vpack.c.bf16 %v277_v29, %v270_v28  ;;  %v201_v43 = vsub.f32 %v2563_v51, %v200_v62  ;;  %v2647_v44 = vpack.c.bf16 %v181_v18, %v174_v11  ;;  %v188_v45 = vand.u32 4294901760, %v187_v14 }
  0x4c   :  { %2040 = vmatpush3.bf16.msra.mxu0 %v2551_v46  ;;  %2184 = vmatpush3.bf16.msra.mxu1 %v2551_v46  ;;  %v195_v47 = vand.u32 4294901760, %v194_v15  ;;  %v208_v55 = vsub.f32 %v2574_v56, %v207_v7  ;;  %v215_v57 = vsub.f32 %v2580_v60, %v214_v16  ;;  %v222_v11 = vsub.f32 %v2585_v63, %v221_v19 }
  0x4d   :  { %2041 = vmatprep.subr.bf16.mxu0 %v2444_v0  ;;  %2185 = vmatprep.subr.bf16.mxu1 %v2444_v0  ;;  %v202_v59 = vand.u32 4294901760, %v201_v43  ;;  %v229_v16 = vsub.f32 %v2587_v2, %v228_v20  ;;  %v236_v17 = vsub.f32 %v2590_v3, %v235_v22  ;;  %v243_v18 = vsub.f32 %v2592_v4, %v242_v23 }
  0x4e   :  { %v2655_v58 = vpack.c.bf16 %v195_v47, %v188_v45  ;;  %v209_v62 = vand.u32 4294901760, %v208_v55  ;;  %v216_v7 = vand.u32 4294901760, %v215_v57  ;;  %v223_v15 = vand.u32 4294901760, %v222_v11 }
  0x4f   :  { %v237_v43 = vand.u32 4294901760, %v236_v17  ;;  %v250_v45 = vsub.f32 %v2594_v5, %v249_v24  ;;  %v257_v47 = vsub.f32 %v2596_v6, %v256_v25  ;;  %v244_v22 = vand.u32 4294901760, %v243_v18 }
  0x50   :  { %2043 = vmatpush3.bf16.msra.mxu0 %v2566_v52  ;;  %2187 = vmatpush3.bf16.msra.mxu1 %v2566_v52  ;;  %v2662_v14 = vpack.c.bf16 %v209_v62, %v202_v59  ;;  %v2669_v19 = vpack.c.bf16 %v223_v15, %v216_v7  ;;  %v264_v23 = vsub.f32 %v2600_v8, %v263_v27 }
  0x51   :  { %2044 = vmatprep.subr.bf16.mxu0 %v2444_v0  ;;  %2188 = vmatprep.subr.bf16.mxu1 %v2444_v0  ;;  %v251_v55 = vand.u32 4294901760, %v250_v45  ;;  %v258_v57 = vand.u32 4294901760, %v257_v47  ;;  %v271_v62 = vsub.f32 %v2602_v9, %v270_v28  ;;  %v278_v25 = vsub.f32 %v2604_v10, %v277_v29 }
  0x52   :  { %v265_v24 = vand.u32 4294901760, %v264_v23  ;;  %v2696_v28 = vpack.c.bf16 %v2541_v37, %v2536_v30  ;;  %v2703_v29 = vpack.c.bf16 %v2556_v49, %v2554_v48  ;;  %v2711_v30 = vpack.c.bf16 %v2574_v56, %v2563_v51 }
  0x53   :  { %v2680_v59 = vpack.c.bf16 %v251_v55, %v244_v22  ;;  %v272_v7 = vand.u32 4294901760, %v271_v62  ;;  %v279_v27 = vand.u32 4294901760, %v278_v25  ;;  %v2717_v37 = vpack.c.bf16 %v2585_v63, %v2580_v60 }
  0x54   :  { %2046 = vmatpush3.bf16.msra.mxu0 %v2569_v53  ;;  %2190 = vmatpush3.bf16.msra.mxu1 %v2569_v53  ;;  %v2686_v11 = vpack.c.bf16 %v265_v24, %v258_v57  ;;  %v2723_v48 = vpack.c.bf16 %v2590_v3, %v2587_v2  ;;  %v2729_v49 = vpack.c.bf16 %v2594_v5, %v2592_v4 }
  0x55   :  { %2047 = vmatprep.subr.bf16.mxu0 %v2444_v0  ;;  %2191 = vmatprep.subr.bf16.mxu1 %v2444_v0  ;;  %v2690_v15 = vpack.c.bf16 %v279_v27, %v272_v7  ;;  %v2735_v51 = vpack.c.bf16 %v2600_v8, %v2596_v6  ;;  %v2741_v56 = vpack.c.bf16 %v2604_v10, %v2602_v9 }
  0x58   :  { %2049 = vmatpush3.bf16.msra.mxu0 %v2571_v54  ;;  %2193 = vmatpush3.bf16.msra.mxu1 %v2571_v54 }
  0x59   :  { %2050 = vmatprep.subr.bf16.mxu0 %v2444_v0  ;;  %2194 = vmatprep.subr.bf16.mxu1 %v2444_v0 }
  0x5b   :  { %1639 = vmatmul.mubr.f32.vlgmr.msra.gmra.mrb[0].mxu0 %v163_v42  ;;  %v230_v42 = vand.u32 4294901760, %v229_v16 }
  0x5c   :  { %2052 = vmatpush3.bf16.msra.mxu0 %v2647_v44  ;;  %1673 = vmatprep.mubr.msk.f32.mxu0 %vm2445_vm0, %v2446_v1 }
  0x5d   :  { %2053 = vmatprep.subr.bf16.mxu0 %v2444_v0  ;;  %v2675_v20 = vpack.c.bf16 %v237_v43, %v230_v42 }
  0x60   :  { %2055 = vmatpush3.bf16.msra.mxu0 %v2655_v58 }
  0x61   :  { %2056 = vmatprep.subr.bf16.mxu0 %v2444_v0 }
  0x64   :  { %2058 = vmatpush3.bf16.msra.mxu0 %v2662_v14 }
  0x65   :  { %2059 = vmatprep.subr.bf16.mxu0 %v2444_v0 }
  0x68   :  { %2061 = vmatpush3.bf16.msra.mxu0 %v2669_v19 }
  0x69   :  { %2062 = vmatprep.subr.bf16.mxu0 %v2444_v0 }
  0x6c   :  { %2064 = vmatpush3.bf16.msra.mxu0 %v2675_v20 }
  0x6d   :  { %2065 = vmatprep.subr.bf16.mxu0 %v2444_v0 }
  0x70   :  { %2067 = vmatpush3.bf16.msra.mxu0 %v2680_v59 }
  0x71   :  { %2068 = vmatprep.subr.bf16.mxu0 %v2444_v0 }
  0x74   :  { %2070 = vmatpush3.bf16.msra.mxu0 %v2686_v11 }
  0x75   :  { %2071 = vmatprep.subr.bf16.mxu0 %v2444_v0 }
  0x78   :  { %2073 = vmatpush3.bf16.msra.mxu0 %v2690_v15 }
  0x79   :  { %2074 = vmatprep.subr.bf16.mxu0 %v2444_v0 }
  0x7b   :  { %1674 = vmatmul.mubr.f32.vlgmr.msra.gmra.mrb[0].mxu0 %v2546_v38 }
  0x7c   :  { %2076 = vmatpush3.bf16.msra.mxu0 %v2696_v28  ;;  %1708 = vmatprep.mubr.msk.f32.mxu0 %vm2445_vm0, %v2446_v1 }
  0x7d   :  { %2077 = vmatprep.subr.bf16.mxu0 %v2444_v0 }
  0x80   :  { %2079 = vmatpush3.bf16.msra.mxu0 %v2703_v29 }
  0x81   :  { %2080 = vmatprep.subr.bf16.mxu0 %v2444_v0 }
  0x84   :  { %2082 = vmatpush3.bf16.msra.mxu0 %v2711_v30 }
  0x85   :  { %2083 = vmatprep.subr.bf16.mxu0 %v2444_v0 }
  0x88   :  { %2085 = vmatpush3.bf16.msra.mxu0 %v2717_v37 }
  0x89   :  { %2086 = vmatprep.subr.bf16.mxu0 %v2444_v0 }
  0x8c   :  { %2088 = vmatpush3.bf16.msra.mxu0 %v2723_v48 }
  0x8d   :  { %2089 = vmatprep.subr.bf16.mxu0 %v2444_v0 }
  0x90   :  { %2091 = vmatpush3.bf16.msra.mxu0 %v2729_v49 }
  0x91   :  { %2092 = vmatprep.subr.bf16.mxu0 %v2444_v0 }
  0x94   :  { %2094 = vmatpush3.bf16.msra.mxu0 %v2735_v51 }
  0x95   :  { %2095 = vmatprep.subr.bf16.mxu0 %v2444_v0 }
  0x98   :  { %2097 = vmatpush3.bf16.msra.mxu0 %v2741_v56 }
  0x99   :  { %2098 = vmatprep.subr.bf16.mxu0 %v2444_v0 }
  0x9b   :  { %1709 = vmatmul.mubr.f32.vlgmr.msra.gmra.mrb[0].mxu0 %v2561_v50 }
  0x9c   :  { %2100 = vmatpush3.bf16.msra.mxu0 %v2520_v12  ;;  %1743 = vmatprep.mubr.msk.f32.mxu0 %vm2445_vm0, %v2446_v1 }
  0x9d   :  { %2101 = vmatprep.subr.bf16.mxu0 %v2444_v0 }
  0xa0   :  { %2103 = vmatpush3.bf16.msra.mxu0 %v2523_v13 }
  0xa1   :  { %2104 = vmatprep.subr.bf16.mxu0 %v2444_v0 }
  0xa4   :  { %2106 = vmatpush3.bf16.msra.mxu0 %v2529_v21 }
  0xa5   :  { %2107 = vmatprep.subr.bf16.mxu0 %v2444_v0 }
  0xa8   :  { %2109 = vmatpush3.bf16.msra.mxu0 %v2539_v31 }
  0xa9   :  { %2110 = vmatprep.subr.bf16.mxu0 %v2444_v0 }
  0xac   :  { %2112 = vmatpush3.bf16.msra.mxu0 %v2551_v46 }
  0xad   :  { %2113 = vmatprep.subr.bf16.mxu0 %v2444_v0 }
  0xb0   :  { %2115 = vmatpush3.bf16.msra.mxu0 %v2566_v52 }
  0xb1   :  { %2116 = vmatprep.subr.bf16.mxu0 %v2444_v0 }
  0xb4   :  { %2118 = vmatpush3.bf16.msra.mxu0 %v2569_v53 }
  0xb5   :  { %2119 = vmatprep.subr.bf16.mxu0 %v2444_v0 }
  0xb8   :  { %2121 = vmatpush3.bf16.msra.mxu0 %v2571_v54 }
  0xb9   :  { %2122 = vmatprep.subr.bf16.mxu0 %v2444_v0 }
  0xbb   :  { %1744 = vmatmul.mubr.f32.vlgmr.msra.gmra.mrb[0].mxu0 %v161_v61 }
  0xbc   :  { %2124 = vmatpush3.bf16.msra.mxu0 %v2625_v32  ;;  %1778 = vmatprep.mubr.msk.f32.mxu0 %vm2445_vm0, %v2446_v1 }
  0xbd   :  { %2125 = vmatprep.subr.bf16.mxu0 %v2444_v0 }
  0xc0   :  { %2127 = vmatpush3.bf16.msra.mxu0 %v2628_v33 }
  0xc1   :  { %2128 = vmatprep.subr.bf16.mxu0 %v2444_v0 }
  0xc4   :  { %2130 = vmatpush3.bf16.msra.mxu0 %v2630_v34 }
  0xc5   :  { %2131 = vmatprep.subr.bf16.mxu0 %v2444_v0 }
  0xc8   :  { %2133 = vmatpush3.bf16.msra.mxu0 %v2632_v35 }
  0xc9   :  { %2134 = vmatprep.subr.bf16.mxu0 %v2444_v0 }
  0xcc   :  { %2136 = vmatpush3.bf16.msra.mxu0 %v2634_v36 }
  0xcd   :  { %2137 = vmatprep.subr.bf16.mxu0 %v2444_v0 }
  0xd0   :  { %2139 = vmatpush3.bf16.msra.mxu0 %v2637_v39 }
  0xd1   :  { %2140 = vmatprep.subr.bf16.mxu0 %v2444_v0 }
  0xd4   :  { %2142 = vmatpush3.bf16.msra.mxu0 %v2639_v40 }
  0xd5   :  { %2143 = vmatprep.subr.bf16.mxu0 %v2444_v0 }
  0xd8   :  { %2145 = vmatpush3.bf16.msra.mxu0 %v2641_v41 }
  0xd9   :  { %2146 = vmatprep.subr.bf16.mxu0 %v2444_v0 }
  0xdb   :  { %1779 = vmatmul.mubr.f32.vlgmr.msra.gmra.mrb[0].mxu0 %v2546_v38 }
  0xdc   :  { %2148 = vmatpush3.bf16.msra.mxu0 %v2520_v12  ;;  %1813 = vmatprep.mubr.msk.f32.mxu0 %vm2445_vm0, %v2446_v1 }
  0xdd   :  { %2149 = vmatprep.subr.bf16.mxu0 %v2444_v0 }
  0xe0   :  { %2151 = vmatpush3.bf16.msra.mxu0 %v2523_v13 }
  0xe1   :  { %2152 = vmatprep.subr.bf16.mxu0 %v2444_v0 }
  0xe4   :  { %2154 = vmatpush3.bf16.msra.mxu0 %v2529_v21 }
  0xe5   :  { %2155 = vmatprep.subr.bf16.mxu0 %v2444_v0 }
  0xe8   :  { %2157 = vmatpush3.bf16.msra.mxu0 %v2539_v31 }
  0xe9   :  { %2158 = vmatprep.subr.bf16.mxu0 %v2444_v0 }
  0xec   :  { %2160 = vmatpush3.bf16.msra.mxu0 %v2551_v46 }
  0xed   :  { %2161 = vmatprep.subr.bf16.mxu0 %v2444_v0 }
  0xf0   :  { %2163 = vmatpush3.bf16.msra.mxu0 %v2566_v52 }
  0xf1   :  { %2164 = vmatprep.subr.bf16.mxu0 %v2444_v0 }
  0xf4   :  { %2166 = vmatpush3.bf16.msra.mxu0 %v2569_v53 }
  0xf5   :  { %2167 = vmatprep.subr.bf16.mxu0 %v2444_v0 }
  0xf8   :  { %2169 = vmatpush3.bf16.msra.mxu0 %v2571_v54 }
  0xfb   :  { %1814 = vmatmul.mubr.f32.vlgmr.msra.gmra.mrb[0].mxu0 %v2546_v38 }
 0x1ce   :  { %v715_v50 = vpop.f32.mrb[0].mxu0 }
 0x1cf   :  { %v719_v60 = vmul.f32 0.03125, %v715_v50  ;;  %v1815_v61 = vpop.f32.mrb[1].mxu0 }
 0x1d1   :  { %v2805_v63 = vsub.f32 %v2533_v26, %v719_v60 }
 0x1d3   :  { %v721_v2 = vmul.f32 %v2805_v63, %v2805_v63 }
 0x1d5   :  { %v2809_v3 = vand.u32 4294901760, %v721_v2 }
 0x1d7   :  { %v804_v4 = vsub.f32 %v721_v2, %v2809_v3 }
 0x1d9   :  { %v805_v5 = vand.u32 4294901760, %v804_v4 }
 0x1db   :  { %v806_v6 = vsub.f32 %v804_v4, %v805_v5 }
 0x1dd   :  { %v807_v8 = vand.u32 4294901760, %v806_v6 }
 0x1df   :  { %1849 = vmatmul.mubr.f32.vlgmr.msra.gmra.mrb[0].mxu1 %v807_v8 }
 0x1e0   :  { %2196 = vmatpush3.bf16.msra.mxu1 %v2647_v44  ;;  %1883 = vmatprep.mubr.msk.f32.mxu1 %vm2445_vm0, %v2446_v1 }
 0x1e1   :  { %2197 = vmatprep.subr.bf16.mxu1 %v2444_v0 }
 0x1e4   :  { %2199 = vmatpush3.bf16.msra.mxu1 %v2655_v58 }
 0x1e5   :  { %2200 = vmatprep.subr.bf16.mxu1 %v2444_v0 }
 0x1e8   :  { %2202 = vmatpush3.bf16.msra.mxu1 %v2662_v14 }
 0x1e9   :  { %2203 = vmatprep.subr.bf16.mxu1 %v2444_v0 }
 0x1ec   :  { %2205 = vmatpush3.bf16.msra.mxu1 %v2669_v19 }
 0x1ed   :  { %2206 = vmatprep.subr.bf16.mxu1 %v2444_v0 }
 0x1f0   :  { %2208 = vmatpush3.bf16.msra.mxu1 %v2675_v20 }
 0x1f1   :  { %2209 = vmatprep.subr.bf16.mxu1 %v2444_v0 }
 0x1f4   :  { %2211 = vmatpush3.bf16.msra.mxu1 %v2680_v59 }
 0x1f5   :  { %2212 = vmatprep.subr.bf16.mxu1 %v2444_v0 }
 0x1f8   :  { %2214 = vmatpush3.bf16.msra.mxu1 %v2686_v11 }
 0x1f9   :  { %2215 = vmatprep.subr.bf16.mxu1 %v2444_v0 }
 0x1fc   :  { %2217 = vmatpush3.bf16.msra.mxu1 %v2690_v15 }
 0x1fd   :  { %2218 = vmatprep.subr.bf16.mxu1 %v2444_v0 }
 0x1ff   :  { %1884 = vmatmul.mubr.f32.vlgmr.msra.gmra.mrb[0].mxu1 %v2809_v3 }
 0x200   :  { %2220 = vmatpush3.bf16.msra.mxu1 %v2696_v28  ;;  %1918 = vmatprep.mubr.msk.f32.mxu1 %vm2445_vm0, %v2446_v1 }
 0x201   :  { %2221 = vmatprep.subr.bf16.mxu1 %v2444_v0 }
 0x204   :  { %2223 = vmatpush3.bf16.msra.mxu1 %v2703_v29 }
 0x205   :  { %2224 = vmatprep.subr.bf16.mxu1 %v2444_v0 }
 0x208   :  { %2226 = vmatpush3.bf16.msra.mxu1 %v2711_v30 }
 0x209   :  { %2227 = vmatprep.subr.bf16.mxu1 %v2444_v0 }
 0x20c   :  { %2229 = vmatpush3.bf16.msra.mxu1 %v2717_v37 }
 0x20d   :  { %2230 = vmatprep.subr.bf16.mxu1 %v2444_v0 }
 0x210   :  { %2232 = vmatpush3.bf16.msra.mxu1 %v2723_v48 }
 0x211   :  { %2233 = vmatprep.subr.bf16.mxu1 %v2444_v0 }
 0x214   :  { %2235 = vmatpush3.bf16.msra.mxu1 %v2729_v49 }
 0x215   :  { %2236 = vmatprep.subr.bf16.mxu1 %v2444_v0 }
 0x218   :  { %2238 = vmatpush3.bf16.msra.mxu1 %v2735_v51 }
 0x219   :  { %2239 = vmatprep.subr.bf16.mxu1 %v2444_v0 }
 0x21c   :  { %2241 = vmatpush3.bf16.msra.mxu1 %v2741_v56 }
 0x21d   :  { %2242 = vmatprep.subr.bf16.mxu1 %v2444_v0 }
 0x21f   :  { %1919 = vmatmul.mubr.f32.vlgmr.msra.gmra.mrb[0].mxu1 %v804_v4 }
 0x220   :  { %2244 = vmatpush3.bf16.msra.mxu1 %v2520_v12  ;;  %1953 = vmatprep.mubr.msk.f32.mxu1 %vm2445_vm0, %v2446_v1 }
 0x221   :  { %2245 = vmatprep.subr.bf16.mxu1 %v2444_v0 }
 0x224   :  { %2247 = vmatpush3.bf16.msra.mxu1 %v2523_v13 }
 0x225   :  { %2248 = vmatprep.subr.bf16.mxu1 %v2444_v0 }
 0x228   :  { %2250 = vmatpush3.bf16.msra.mxu1 %v2529_v21 }
 0x229   :  { %2251 = vmatprep.subr.bf16.mxu1 %v2444_v0 }
 0x22c   :  { %2253 = vmatpush3.bf16.msra.mxu1 %v2539_v31 }
 0x22d   :  { %2254 = vmatprep.subr.bf16.mxu1 %v2444_v0 }
 0x230   :  { %2256 = vmatpush3.bf16.msra.mxu1 %v2551_v46 }
 0x231   :  { %2257 = vmatprep.subr.bf16.mxu1 %v2444_v0 }
 0x234   :  { %2259 = vmatpush3.bf16.msra.mxu1 %v2566_v52 }
 0x235   :  { %2260 = vmatprep.subr.bf16.mxu1 %v2444_v0 }
 0x238   :  { %2262 = vmatpush3.bf16.msra.mxu1 %v2569_v53 }
 0x239   :  { %2263 = vmatprep.subr.bf16.mxu1 %v2444_v0 }
 0x23c   :  { %2265 = vmatpush3.bf16.msra.mxu1 %v2571_v54 }
 0x23d   :  { %2266 = vmatprep.subr.bf16.mxu1 %v2444_v0 }
 0x23f   :  { %1954 = vmatmul.mubr.f32.vlgmr.msra.gmra.mrb[0].mxu1 %v805_v5 }
 0x240   :  { %2268 = vmatpush3.bf16.msra.mxu1 %v2625_v32  ;;  %1988 = vmatprep.mubr.msk.f32.mxu1 %vm2445_vm0, %v2446_v1 }
 0x241   :  { %2269 = vmatprep.subr.bf16.mxu1 %v2444_v0 }
 0x244   :  { %2271 = vmatpush3.bf16.msra.mxu1 %v2628_v33 }
 0x245   :  { %2272 = vmatprep.subr.bf16.mxu1 %v2444_v0 }
 0x248   :  { %2274 = vmatpush3.bf16.msra.mxu1 %v2630_v34 }
 0x249   :  { %2275 = vmatprep.subr.bf16.mxu1 %v2444_v0 }
 0x24c   :  { %2277 = vmatpush3.bf16.msra.mxu1 %v2632_v35 }
 0x24d   :  { %2278 = vmatprep.subr.bf16.mxu1 %v2444_v0 }
 0x250   :  { %2280 = vmatpush3.bf16.msra.mxu1 %v2634_v36 }
 0x251   :  { %2281 = vmatprep.subr.bf16.mxu1 %v2444_v0 }
 0x254   :  { %2283 = vmatpush3.bf16.msra.mxu1 %v2637_v39 }
 0x255   :  { %2284 = vmatprep.subr.bf16.mxu1 %v2444_v0 }
 0x258   :  { %2286 = vmatpush3.bf16.msra.mxu1 %v2639_v40 }
 0x259   :  { %2287 = vmatprep.subr.bf16.mxu1 %v2444_v0 }
 0x25c   :  { %2289 = vmatpush3.bf16.msra.mxu1 %v2641_v41 }
 0x25d   :  { %2290 = vmatprep.subr.bf16.mxu1 %v2444_v0 }
 0x25f   :  { %1989 = vmatmul.mubr.f32.vlgmr.msra.gmra.mrb[0].mxu1 %v2809_v3 }
 0x260   :  { %2292 = vmatpush3.bf16.msra.mxu1 %v2520_v12  ;;  %2023 = vmatprep.mubr.msk.f32.mxu1 %vm2445_vm0, %v2446_v1 }
 0x261   :  { %2293 = vmatprep.subr.bf16.mxu1 %v2444_v0 }
 0x264   :  { %2295 = vmatpush3.bf16.msra.mxu1 %v2523_v13 }
 0x265   :  { %2296 = vmatprep.subr.bf16.mxu1 %v2444_v0 }
 0x268   :  { %2298 = vmatpush3.bf16.msra.mxu1 %v2529_v21 }
 0x269   :  { %2299 = vmatprep.subr.bf16.mxu1 %v2444_v0 }
 0x26c   :  { %2301 = vmatpush3.bf16.msra.mxu1 %v2539_v31  ;;  %v1400_v31 = vld [vmem:[%s2925_s2] ss:$0 sm:$0xff] }
 0x26d   :  { %2302 = vmatprep.subr.bf16.mxu1 %v2444_v0 }
 0x270   :  { %2304 = vmatpush3.bf16.msra.mxu1 %v2551_v46 }
 0x271   :  { %2305 = vmatprep.subr.bf16.mxu1 %v2444_v0 }
 0x274   :  { %2307 = vmatpush3.bf16.msra.mxu1 %v2566_v52 }
 0x275   :  { %2308 = vmatprep.subr.bf16.mxu1 %v2444_v0 }
 0x278   :  { %2310 = vmatpush3.bf16.msra.mxu1 %v2569_v53 }
 0x279   :  { %2311 = vmatprep.subr.bf16.mxu1 %v2444_v0  ;;  %v1401_v0 = vld [vmem:[%s2926_s3] ss:$0 sm:$0xff] }
 0x27c   :  { %2313 = vmatpush3.bf16.msra.mxu1 %v2571_v54 }
 0x27f   :  { %2024 = vmatmul.mubr.f32.vlgmr.msra.gmra.mrb[0].mxu1 %v2809_v3 }
 0x352   :  { %v1359_v1 = vpop.f32.mrb[0].mxu1 }
 0x353   :  { %v1363_v12 = vmul.f32 0.03125, %v1359_v1  ;;  %v2025_v13 = vpop.f32.mrb[1].mxu1 }
 0x355   :  { %v1364_v21 = vadd.f32 1e-05, %v1363_v12 }
 0x357   :  { %2343 = vrsqrt.f32 %v1364_v21 }
 0x361   :  { %v2344_v26 = vpop.eup %2343 }
 0x362   :  { %v1366_v38 = vmul.f32 %v2344_v26, %v2805_v63 }
 0x364   :  { %v1374_v46 = vmul.f32 %v1400_v31, %v1366_v38 }
 0x366   :  { %v1382_v52 = vadd.f32 %v1401_v0, %v1374_v46 }
 0x368   :  { %1383 = vst [vmem:[#allocation8] sm:$0xf] %v1382_v52 }
 0x369   :  { %2422 = shalt.err (!%p2419_p0)
}
 0x36a   :  { %s2423_s11 = scalar_lea.hbm %s2928_s5, 64 }
 0x36b   :  { %p2424_p1 = scmp.ne.s32.totalorder %s2928_s5, %s2423_s11  ;;  %p2427_p2 = scmp.lt.u32.totalorder %s2423_s11, %s2928_s5 }
 0x36d   :  { %p2429_p3 = pnand %p2427_p2, %p2424_p1 }
 0x36f   :  { %2432 = shalt.err (!%p2429_p3)
}
 0x370   :  { %1393 = dma.vmem_to_hbm [thread:$0]  %s1391_s8, 64, %s2928_s5, [#allocation4]  }
 0x371   :  { %2437 = dma.done.wait [#allocation4], 64  }
 0x372   :  { %2438 = vsyncadd [#allocation4], 4294967232 }
 0x373   :  { %1397 = vsyncpa [#allocation3], 1 }
 0x374   :  { %1398 = vsyncpa [#allocation6], 1 }
 0x375   :  { %1399 = vsyncpa [#allocation4], 1 }

</bundles_post_ra>
